<compile_context>
chip_gen: v5e
topology: v5e:2x2
jax: 0.10.0
libtpu: 0.0.40
codegen_flags: <defaults>
</compile_context>

<pallas_src>
import functools

import numpy as np
import jax
import jax.numpy as jnp
from jax import lax
from jax.experimental import pallas as pl
from jax.experimental.pallas import tpu as pltpu


def _inv_res_kernel(*refs, expand, use_res, offsets, lanes):
    if expand:
        x_ref, w1_ref, b1_ref, mw_ref, b2_ref, w2_ref, b3_ref, o_ref = refs
    else:
        x_ref, mw_ref, b2_ref, w2_ref, b3_ref, o_ref = refs
        w1_ref = b1_ref = None

    xb = x_ref[...]                                   # (Cin, L) bf16

    # --- 1x1 expand conv (MXU, bf16 operands, f32 acc) + bias + ReLU6 ---
    if expand:
        hb = jnp.dot(w1_ref[...], xb, preferred_element_type=jnp.float32)
        hb = jnp.clip(hb + b1_ref[...], 0.0, 6.0)     # (hidden, L) f32
    else:
        hb = xb.astype(jnp.float32)                   # hidden == Cin

    # --- 3x3 depthwise conv, pad=1 (stride handled in wrapper) ---
    # mw_ref[t] = boundary_mask[t] * BN-folded dw weight[t] (precomputed), so
    # each tap is one lane-roll (XLU) + one multiply-add (VPU).  Every lane
    # that the roll wraps across an image/row boundary has mask == 0.
    center = len(offsets) // 2                        # off == 0, all-ones mask
    acc = hb * mw_ref[center]
    for t, off in enumerate(offsets):
        if t == center:
            continue
        sh = pltpu.roll(hb, (-off) % lanes, axis=1)
        acc = acc + sh * mw_ref[t]
    d = jnp.clip(acc + b2_ref[...], 0.0, 6.0)

    # --- 1x1 project conv (MXU, bf16 operands, f32 acc) + bias ---
    yb = jnp.dot(w2_ref[...], d.astype(jnp.bfloat16),
                 preferred_element_type=jnp.float32)  # (oup, L) f32
    yb = yb + b3_ref[...]

    if use_res:
        yb = yb + xb.astype(jnp.float32)

    o_ref[...] = yb.astype(o_ref.dtype)               # lane-dense (oup, L) store


def _tap_tables(H, W):
    """Flat lane offsets and 0/1 validity masks for the 3x3, pad=1 depthwise conv."""
    HW = H * W
    idx = np.arange(HW)
    ii, jj = idx // W, idx % W
    offsets = []
    masks = np.zeros((9, 1, HW), np.float32)
    t = 0
    for ky in range(3):
        for kx in range(3):
            dy, dx = ky - 1, kx - 1
            offsets.append(dy * W + dx)
            ok = (ii + dy >= 0) & (ii + dy < H) & (jj + dx >= 0) & (jj + dx < W)
            masks[t, 0, :] = ok.astype(np.float32)
            t += 1
    return tuple(offsets), masks


def inverted_residual_pallas(x_nchw, params, *, stride, expand_ratio, b_tile=None):
    N, Cin, H, W = x_nchw.shape
    hidden = params["dw33"].shape[-1]
    oup = params["w2"].shape[1]
    expand = expand_ratio != 1
    use_res = (stride == 1) and (Cin == oup)
    HW = H * W

    if b_tile is None:
        # Fuse images into the lane axis only while the batch grid stays >= 4
        # steps (keeps v7x's 2 TensorCores balanced with pipeline overlap).
        b_tile = 1
        for cand in (8, 4, 2):
            if N % cand == 0 and N // cand >= 4:
                b_tile = cand
                break
    assert N % b_tile == 0
    L = b_tile * HW

    offsets, masks = _tap_tables(H, W)                 # masks: (9, 1, HW)
    masks_l = np.tile(masks, (1, 1, b_tile))           # (9, 1, L) per-image tiled

    # Fold BN scales into conv weights (one-time, host side); biases stay separate.
    s2 = params["s2"].reshape(-1)
    s3 = params["s3"].reshape(-1)
    dwf = params["dw33"].reshape(9, hidden) * s2[None, :]                # (9, hidden)
    mw = (jnp.asarray(masks_l) * dwf[:, :, None]).astype(jnp.float32)    # (9, hidden, L)
    w2t = (params["w2"] * s3[None, :]).T.astype(jnp.bfloat16)            # (oup, hidden)
    b2c = params["b2"].reshape(hidden, 1).astype(jnp.float32)
    b3c = params["b3"].reshape(oup, 1).astype(jnp.float32)

    # Channel-major slab (Cin, N*HW); bf16 halves the streamed HBM read.
    xm = (x_nchw.reshape(N, Cin, HW).transpose(1, 0, 2)
          .reshape(Cin, N * HW).astype(jnp.bfloat16))

    def const_spec(a):
        nd = a.ndim
        return pl.BlockSpec(a.shape, lambda n, _nd=nd: (0,) * _nd)

    args = [xm]
    in_specs = [pl.BlockSpec((Cin, L), lambda n: (0, n))]
    if expand:
        s1 = params["s1"].reshape(-1)
        w1t = (params["w1"] * s1[None, :]).T.astype(jnp.bfloat16)        # (hidden, Cin)
        b1c = params["b1"].reshape(hidden, 1).astype(jnp.float32)
        args += [w1t, b1c]
        in_specs += [const_spec(w1t), const_spec(b1c)]
    args += [mw, b2c, w2t, b3c]
    in_specs += [const_spec(mw), const_spec(b2c), const_spec(w2t), const_spec(b3c)]

    kernel = functools.partial(_inv_res_kernel, expand=expand, use_res=use_res,
                               offsets=offsets, lanes=L)

    out = pl.pallas_call(
        kernel,
        out_shape=jax.ShapeDtypeStruct((oup, N * HW), x_nchw.dtype),
        grid=(N // b_tile,),
        in_specs=in_specs,
        out_specs=pl.BlockSpec((oup, L), lambda n: (0, n)),
        compiler_params=pltpu.CompilerParams(dimension_semantics=("parallel",)),
    )(*args)

    y = out.reshape(oup, N, HW).transpose(1, 0, 2).reshape(N, oup, H, W)
    if stride != 1:
        y = y[:, :, ::stride, ::stride]           # stride-2 subsample (see TODO above)
    return y


def make_params(key, inp, oup, expand_ratio, dtype=jnp.float32):
    hidden = int(inp * expand_ratio)
    ks = jax.random.split(key, 15)

    def bn(k0, k1, k2, k3, c):
        gamma = 1.0 + 0.1 * jax.random.normal(k0, (c,), dtype)
        beta = 0.1 * jax.random.normal(k1, (c,), dtype)
        mean = 0.1 * jax.random.normal(k2, (c,), dtype)
        var = 1.0 + jax.random.uniform(k3, (c,), dtype, 0.0, 0.5)
        scale = gamma / jnp.sqrt(var + 1e-5)
        bias = beta - mean * scale
        return scale.reshape(1, c), bias.reshape(1, c)

    p = {}
    if expand_ratio != 1:
        p["w1"] = 0.2 * jax.random.normal(ks[0], (inp, hidden), dtype)   # 1x1 expand (Cin, hidden)
        p["s1"], p["b1"] = bn(ks[1], ks[2], ks[3], ks[4], hidden)
    p["dw33"] = 0.2 * jax.random.normal(ks[5], (3, 3, hidden), dtype)    # depthwise 3x3 per-channel
    p["s2"], p["b2"] = bn(ks[6], ks[7], ks[8], ks[9], hidden)
    p["w2"] = 0.2 * jax.random.normal(ks[10], (hidden, oup), dtype)      # 1x1 project (hidden, oup)
    p["s3"], p["b3"] = bn(ks[11], ks[12], ks[13], ks[14], oup)
    return p


def inverted_residual_ref(x_nchw, params, *, stride, expand_ratio):
    """Pure-JAX f32 reference (lax.conv) matching the PyTorch module (inference-mode BN)."""
    x = jnp.transpose(x_nchw, (0, 2, 3, 1))                    # NHWC
    dn = ("NHWC", "HWIO", "NHWC")
    hidden = params["dw33"].shape[-1]
    if expand_ratio != 1:
        h = lax.conv_general_dilated(
            x, params["w1"].reshape(1, 1, *params["w1"].shape), (1, 1), "VALID",
            dimension_numbers=dn)
        h = jnp.clip(h * params["s1"][0] + params["b1"][0], 0.0, 6.0)
    else:
        h = x
    d = lax.conv_general_dilated(
        h, params["dw33"].reshape(3, 3, 1, hidden), (stride, stride), ((1, 1), (1, 1)),
        dimension_numbers=dn, feature_group_count=hidden)
    d = jnp.clip(d * params["s2"][0] + params["b2"][0], 0.0, 6.0)
    y = lax.conv_general_dilated(
        d, params["w2"].reshape(1, 1, *params["w2"].shape), (1, 1), "VALID",
        dimension_numbers=dn)
    y = y * params["s3"][0] + params["b3"][0]
    if stride == 1 and x.shape[-1] == y.shape[-1]:
        y = y + x
    return jnp.transpose(y, (0, 3, 1, 2))


if __name__ == "__main__":
    key = jax.random.PRNGKey(0)

    # --- Config 1: expand path + residual (stride 1, inp == oup) ---
    N, inp, oup, H, W = 4, 8, 8, 16, 16
    stride, expand_ratio = 1, 4
    kx, kp, key = jax.random.split(key, 3)
    x = jax.random.normal(kx, (N, inp, H, W), jnp.float32)
    params = make_params(kp, inp, oup, expand_ratio)

    y = jax.block_until_ready(
        inverted_residual_pallas(x, params, stride=stride, expand_ratio=expand_ratio))
    y_ref = inverted_residual_ref(x, params, stride=stride, expand_ratio=expand_ratio)
    assert y.shape == y_ref.shape == (N, oup, H, W)
    err1 = float(jnp.max(jnp.abs(y - y_ref)))
    # bf16 streaming input + bf16 MXU operands (f32 accumulation) vs f32 reference.
    assert err1 < 5e-2, f"config1 max abs err {err1}"

    # --- Config 2: no-expand path, stride 2 (no residual) ---
    N2, inp2, oup2 = 2, 16, 24
    stride2, er2 = 2, 1
    kx2, kp2, key = jax.random.split(key, 3)
    x2 = jax.random.normal(kx2, (N2, inp2, H, W), jnp.float32)
    params2 = make_params(kp2, inp2, oup2, er2)

    y2 = jax.block_until_ready(
        inverted_residual_pallas(x2, params2, stride=stride2, expand_ratio=er2))
    y2_ref = inverted_residual_ref(x2, params2, stride=stride2, expand_ratio=er2)
    assert y2.shape == y2_ref.shape == (N2, oup2, H // 2, W // 2)
    err2 = float(jnp.max(jnp.abs(y2 - y2_ref)))
    assert err2 < 5e-2, f"config2 max abs err {err2}"

    print("KERNEL_OK")
</pallas_src>

<mosaic_0001>
module attributes {stable_mosaic.version = 11 : i64} {
  func.func @_inv_res_kernel(%arg0: i32, %arg1: memref<8x256xbf16, #tpu.memory_space<vmem>>, %arg2: memref<32x8xbf16, #tpu.memory_space<vmem>>, %arg3: memref<32x1xf32, #tpu.memory_space<vmem>>, %arg4: memref<9x32x256xf32, #tpu.memory_space<vmem>>, %arg5: memref<32x1xf32, #tpu.memory_space<vmem>>, %arg6: memref<8x32xbf16, #tpu.memory_space<vmem>>, %arg7: memref<8x1xf32, #tpu.memory_space<vmem>>, %arg8: memref<8x256xf32, #tpu.memory_space<vmem>>) attributes {dimension_semantics = [#tpu.dimension_semantics<parallel>], iteration_bounds = array<i64: 4>, scalar_prefetch = 0 : i64, scratch_operands = 0 : i64, tpu.core_type = #tpu.core_type<tc>, window_params = [{transform_indices = @transform_0, window_bounds = array<i64: 8, 256>}, {pipeline_mode = #tpu.pipeline_mode<synchronous>, transform_indices = @transform_1, window_bounds = array<i64: 32, 8>}, {pipeline_mode = #tpu.pipeline_mode<synchronous>, transform_indices = @transform_2, window_bounds = array<i64: 32, 1>}, {pipeline_mode = #tpu.pipeline_mode<synchronous>, transform_indices = @transform_3, window_bounds = array<i64: 9, 32, 256>}, {pipeline_mode = #tpu.pipeline_mode<synchronous>, transform_indices = @transform_4, window_bounds = array<i64: 32, 1>}, {pipeline_mode = #tpu.pipeline_mode<synchronous>, transform_indices = @transform_5, window_bounds = array<i64: 8, 32>}, {pipeline_mode = #tpu.pipeline_mode<synchronous>, transform_indices = @transform_6, window_bounds = array<i64: 8, 1>}, {transform_indices = @transform_7, window_bounds = array<i64: 8, 256>}]} {
    %c0 = arith.constant 0 : index
    %c0_0 = arith.constant 0 : index
    %0 = vector.load %arg1[%c0, %c0_0] : memref<8x256xbf16, #tpu.memory_space<vmem>>, vector<8x256xbf16>
    %c0_1 = arith.constant 0 : index
    %c0_2 = arith.constant 0 : index
    %1 = vector.load %arg2[%c0_1, %c0_2] : memref<32x8xbf16, #tpu.memory_space<vmem>>, vector<32x8xbf16>
    %cst = arith.constant dense<0.000000e+00> : vector<32x256xf32>
    %2 = tpu.matmul %1, %0, %cst {dimension_numbers = #tpu.dot_dimension_numbers<[1], [0], [0], [1], [0, 0, 1, 1], [], []>} : vector<32x8xbf16>, vector<8x256xbf16>, vector<32x256xf32> -> vector<32x256xf32>
    %c0_3 = arith.constant 0 : index
    %c0_4 = arith.constant 0 : index
    %3 = vector.load %arg3[%c0_3, %c0_4] : memref<32x1xf32, #tpu.memory_space<vmem>>, vector<32x1xf32>
    %4 = vector.broadcast %3 : vector<32x1xf32> to vector<32x256xf32>
    %5 = arith.addf %2, %4 : vector<32x256xf32>
    %cst_5 = arith.constant 0.000000e+00 : f32
    %cst_6 = arith.constant 6.000000e+00 : f32
    %6 = vector.broadcast %cst_5 : f32 to vector<32x256xf32>
    %7 = arith.maximumf %6, %5 : vector<32x256xf32>
    %8 = vector.broadcast %cst_6 : f32 to vector<32x256xf32>
    %9 = arith.minimumf %8, %7 : vector<32x256xf32>
    %c4 = arith.constant 4 : index
    %c0_7 = arith.constant 0 : index
    %c0_8 = arith.constant 0 : index
    %10 = vector.load %arg4[%c4, %c0_7, %c0_8] : memref<9x32x256xf32, #tpu.memory_space<vmem>>, vector<1x32x256xf32>
    %11 = vector.shape_cast %10 : vector<1x32x256xf32> to vector<32x256xf32>
    %12 = arith.mulf %9, %11 : vector<32x256xf32>
    %c17_i32 = arith.constant 17 : i32
    %13 = tpu.dynamic_rotate %9 by %c17_i32 dim 1 : vector<32x256xf32>, i32 -> vector<32x256xf32>
    %c0_9 = arith.constant 0 : index
    %c0_10 = arith.constant 0 : index
    %c0_11 = arith.constant 0 : index
    %14 = vector.load %arg4[%c0_9, %c0_10, %c0_11] : memref<9x32x256xf32, #tpu.memory_space<vmem>>, vector<1x32x256xf32>
    %15 = vector.shape_cast %14 : vector<1x32x256xf32> to vector<32x256xf32>
    %16 = arith.mulf %13, %15 : vector<32x256xf32>
    %17 = arith.addf %12, %16 : vector<32x256xf32>
    %c16_i32 = arith.constant 16 : i32
    %18 = tpu.dynamic_rotate %9 by %c16_i32 dim 1 : vector<32x256xf32>, i32 -> vector<32x256xf32>
    %c1 = arith.constant 1 : index
    %c0_12 = arith.constant 0 : index
    %c0_13 = arith.constant 0 : index
    %19 = vector.load %arg4[%c1, %c0_12, %c0_13] : memref<9x32x256xf32, #tpu.memory_space<vmem>>, vector<1x32x256xf32>
    %20 = vector.shape_cast %19 : vector<1x32x256xf32> to vector<32x256xf32>
    %21 = arith.mulf %18, %20 : vector<32x256xf32>
    %22 = arith.addf %17, %21 : vector<32x256xf32>
    %c15_i32 = arith.constant 15 : i32
    %23 = tpu.dynamic_rotate %9 by %c15_i32 dim 1 : vector<32x256xf32>, i32 -> vector<32x256xf32>
    %c2 = arith.constant 2 : index
    %c0_14 = arith.constant 0 : index
    %c0_15 = arith.constant 0 : index
    %24 = vector.load %arg4[%c2, %c0_14, %c0_15] : memref<9x32x256xf32, #tpu.memory_space<vmem>>, vector<1x32x256xf32>
    %25 = vector.shape_cast %24 : vector<1x32x256xf32> to vector<32x256xf32>
    %26 = arith.mulf %23, %25 : vector<32x256xf32>
    %27 = arith.addf %22, %26 : vector<32x256xf32>
    %c1_i32 = arith.constant 1 : i32
    %28 = tpu.dynamic_rotate %9 by %c1_i32 dim 1 : vector<32x256xf32>, i32 -> vector<32x256xf32>
    %c3 = arith.constant 3 : index
    %c0_16 = arith.constant 0 : index
    %c0_17 = arith.constant 0 : index
    %29 = vector.load %arg4[%c3, %c0_16, %c0_17] : memref<9x32x256xf32, #tpu.memory_space<vmem>>, vector<1x32x256xf32>
    %30 = vector.shape_cast %29 : vector<1x32x256xf32> to vector<32x256xf32>
    %31 = arith.mulf %28, %30 : vector<32x256xf32>
    %32 = arith.addf %27, %31 : vector<32x256xf32>
    %c255_i32 = arith.constant 255 : i32
    %33 = tpu.dynamic_rotate %9 by %c255_i32 dim 1 : vector<32x256xf32>, i32 -> vector<32x256xf32>
    %c5 = arith.constant 5 : index
    %c0_18 = arith.constant 0 : index
    %c0_19 = arith.constant 0 : index
    %34 = vector.load %arg4[%c5, %c0_18, %c0_19] : memref<9x32x256xf32, #tpu.memory_space<vmem>>, vector<1x32x256xf32>
    %35 = vector.shape_cast %34 : vector<1x32x256xf32> to vector<32x256xf32>
    %36 = arith.mulf %33, %35 : vector<32x256xf32>
    %37 = arith.addf %32, %36 : vector<32x256xf32>
    %c241_i32 = arith.constant 241 : i32
    %38 = tpu.dynamic_rotate %9 by %c241_i32 dim 1 : vector<32x256xf32>, i32 -> vector<32x256xf32>
    %c6 = arith.constant 6 : index
    %c0_20 = arith.constant 0 : index
    %c0_21 = arith.constant 0 : index
    %39 = vector.load %arg4[%c6, %c0_20, %c0_21] : memref<9x32x256xf32, #tpu.memory_space<vmem>>, vector<1x32x256xf32>
    %40 = vector.shape_cast %39 : vector<1x32x256xf32> to vector<32x256xf32>
    %41 = arith.mulf %38, %40 : vector<32x256xf32>
    %42 = arith.addf %37, %41 : vector<32x256xf32>
    %c240_i32 = arith.constant 240 : i32
    %43 = tpu.dynamic_rotate %9 by %c240_i32 dim 1 : vector<32x256xf32>, i32 -> vector<32x256xf32>
    %c7 = arith.constant 7 : index
    %c0_22 = arith.constant 0 : index
    %c0_23 = arith.constant 0 : index
    %44 = vector.load %arg4[%c7, %c0_22, %c0_23] : memref<9x32x256xf32, #tpu.memory_space<vmem>>, vector<1x32x256xf32>
    %45 = vector.shape_cast %44 : vector<1x32x256xf32> to vector<32x256xf32>
    %46 = arith.mulf %43, %45 : vector<32x256xf32>
    %47 = arith.addf %42, %46 : vector<32x256xf32>
    %c239_i32 = arith.constant 239 : i32
    %48 = tpu.dynamic_rotate %9 by %c239_i32 dim 1 : vector<32x256xf32>, i32 -> vector<32x256xf32>
    %c8 = arith.constant 8 : index
    %c0_24 = arith.constant 0 : index
    %c0_25 = arith.constant 0 : index
    %49 = vector.load %arg4[%c8, %c0_24, %c0_25] : memref<9x32x256xf32, #tpu.memory_space<vmem>>, vector<1x32x256xf32>
    %50 = vector.shape_cast %49 : vector<1x32x256xf32> to vector<32x256xf32>
    %51 = arith.mulf %48, %50 : vector<32x256xf32>
    %52 = arith.addf %47, %51 : vector<32x256xf32>
    %c0_26 = arith.constant 0 : index
    %c0_27 = arith.constant 0 : index
    %53 = vector.load %arg5[%c0_26, %c0_27] : memref<32x1xf32, #tpu.memory_space<vmem>>, vector<32x1xf32>
    %54 = vector.broadcast %53 : vector<32x1xf32> to vector<32x256xf32>
    %55 = arith.addf %52, %54 : vector<32x256xf32>
    %cst_28 = arith.constant 0.000000e+00 : f32
    %cst_29 = arith.constant 6.000000e+00 : f32
    %56 = vector.broadcast %cst_28 : f32 to vector<32x256xf32>
    %57 = arith.maximumf %56, %55 : vector<32x256xf32>
    %58 = vector.broadcast %cst_29 : f32 to vector<32x256xf32>
    %59 = arith.minimumf %58, %57 : vector<32x256xf32>
    %c0_30 = arith.constant 0 : index
    %c0_31 = arith.constant 0 : index
    %60 = vector.load %arg6[%c0_30, %c0_31] : memref<8x32xbf16, #tpu.memory_space<vmem>>, vector<8x32xbf16>
    %61 = arith.truncf %59 : vector<32x256xf32> to vector<32x256xbf16>
    %cst_32 = arith.constant dense<0.000000e+00> : vector<8x256xf32>
    %62 = tpu.matmul %60, %61, %cst_32 {dimension_numbers = #tpu.dot_dimension_numbers<[1], [0], [0], [1], [0, 0, 1, 1], [], []>} : vector<8x32xbf16>, vector<32x256xbf16>, vector<8x256xf32> -> vector<8x256xf32>
    %c0_33 = arith.constant 0 : index
    %c0_34 = arith.constant 0 : index
    %63 = vector.load %arg7[%c0_33, %c0_34] : memref<8x1xf32, #tpu.memory_space<vmem>>, vector<8x1xf32>
    %64 = vector.broadcast %63 : vector<8x1xf32> to vector<8x256xf32>
    %65 = arith.addf %62, %64 : vector<8x256xf32>
    %66 = arith.extf %0 : vector<8x256xbf16> to vector<8x256xf32>
    %67 = arith.addf %65, %66 : vector<8x256xf32>
    %c0_35 = arith.constant 0 : index
    %c0_36 = arith.constant 0 : index
    %68 = vector.load %arg8[%c0_35, %c0_36] : memref<8x256xf32, #tpu.memory_space<vmem>>, vector<8x256xf32>
    tpu.vector_store %arg8[%c0_35, %c0_36], %67 {strides = array<i32>} : memref<8x256xf32, #tpu.memory_space<vmem>>, vector<8x256xf32>,
    return
  }
  func.func @transform_0(%arg0: i32) -> (i32, i32) {
    %c0_i32 = arith.constant 0 : i32
    %c0_i32_0 = arith.constant 0 : i32
    return %c0_i32, %arg0 : i32, i32
  }
  func.func @transform_1(%arg0: i32) -> (i32, i32) {
    %c0_i32 = arith.constant 0 : i32
    %c0_i32_0 = arith.constant 0 : i32
    %c0_i32_1 = arith.constant 0 : i32
    return %c0_i32, %c0_i32_0 : i32, i32
  }
  func.func @transform_2(%arg0: i32) -> (i32, i32) {
    %c0_i32 = arith.constant 0 : i32
    %c0_i32_0 = arith.constant 0 : i32
    %c0_i32_1 = arith.constant 0 : i32
    return %c0_i32, %c0_i32_0 : i32, i32
  }
  func.func @transform_3(%arg0: i32) -> (i32, i32, i32) {
    %c0_i32 = arith.constant 0 : i32
    %c0_i32_0 = arith.constant 0 : i32
    %c0_i32_1 = arith.constant 0 : i32
    %c0_i32_2 = arith.constant 0 : i32
    return %c0_i32, %c0_i32_0, %c0_i32_1 : i32, i32, i32
  }
  func.func @transform_4(%arg0: i32) -> (i32, i32) {
    %c0_i32 = arith.constant 0 : i32
    %c0_i32_0 = arith.constant 0 : i32
    %c0_i32_1 = arith.constant 0 : i32
    return %c0_i32, %c0_i32_0 : i32, i32
  }
  func.func @transform_5(%arg0: i32) -> (i32, i32) {
    %c0_i32 = arith.constant 0 : i32
    %c0_i32_0 = arith.constant 0 : i32
    %c0_i32_1 = arith.constant 0 : i32
    return %c0_i32, %c0_i32_0 : i32, i32
  }
  func.func @transform_6(%arg0: i32) -> (i32, i32) {
    %c0_i32 = arith.constant 0 : i32
    %c0_i32_0 = arith.constant 0 : i32
    %c0_i32_1 = arith.constant 0 : i32
    return %c0_i32, %c0_i32_0 : i32, i32
  }
  func.func @transform_7(%arg0: i32) -> (i32, i32) {
    %c0_i32 = arith.constant 0 : i32
    %c0_i32_0 = arith.constant 0 : i32
    return %c0_i32, %arg0 : i32, i32
  }
}

</mosaic_0001>

<bundles_post_ra>
// kernel: tpu_custom_call.1
= control target key start
LH: loop header
LB: loop body
LE: loop exit
PB: predicated region body
PF: predicated region fallthrough
CT: control target
= control target key end

     0   :  { %12 = vsyncpa [#allocation3], 0  ;;  %s1727_s0 = inlined_call_operand.vmem [shape: bf16[8,1024], index: 0, kind: input, shape index: {}]   ;;  %s1728_s1 = inlined_call_operand.vmem [shape: bf16[32,8], index: 1, kind: input, shape index: {}]   ;;  %s1729_s2 = inlined_call_operand.vmem [shape: f32[32,1], index: 2, kind: input, shape index: {}]   ;;  %s1730_s3 = inlined_call_operand.hbm [shape: f32[9,32,256], index: 3, kind: input, shape index: {}]   ;;  %s1731_s4 = inlined_call_operand.vmem [shape: f32[32,1], index: 4, kind: input, shape index: {}]   ;;  %s1732_s5 = inlined_call_operand.vmem [shape: bf16[8,32], index: 5, kind: input, shape index: {}]   ;;  %s1733_s6 = inlined_call_operand.vmem [shape: f32[8,1], index: 6, kind: input, shape index: {}]   ;;  %s1734_s7 = inlined_call_operand.hbm [shape: f32[8,1024], index: 7, kind: output, shape index: {}]  }
   0x1   :  { %13 = vsyncpa [#allocation4], 0 }
   0x2   :  { %15 = vsyncpa [#allocation4 + $0x1], 0  ;;  %s1257_s24 = smov 0   ;;  %s1259_s25 = smov 0  }
   0x3   :  { %s1261_s26 = smov 0   ;;  %s1263_s27 = smov 0  }
   0x4 LB: > { %s1278_s28 = sadd.s32 4294967295, %s1203_s27   ;;  %s1011_s29 = sadd.s32 4294967294, %s1203_s27   ;;  %s1203_s27 = sphi %s1263_s27, %s1740_s27   ;;  %s1199_s26 = sphi %s1261_s26, %s1739_s26   ;;  %s1195_s25 = sphi %s1259_s25, %s1738_s25   ;;  %s1191_s24 = sphi %s1257_s24, %s1737_s24  }
   0x5   : > { %s1282_s30 = sadd.s32 1, %s1203_s27   ;;  %s180_s8 = sadd.s32 1, %s1199_s26 }
   0x6   : > { %s177_s9 = ssub.s32 %s1203_s27, %s1282_s30  ;;  %p190_p0 = scmp.ne.s32.totalorder %s1199_s26, %s1195_s25 }
   0x7   : > { %p178_p1 = scmp.eq.s32.totalorder %s177_s9, 0  ;;  %p191_p2 = scmp.eq.s32.totalorder %s1278_s28, 3 }
   0x8   : > { %p196_p3 = scmp.ne.s32.totalorder %s1195_s25, %s1191_s24  ;;  %p197_p4 = scmp.eq.s32.totalorder %s1011_s29, 3 }
   0x9   : > { %s1293_s10 = scalar_select %p178_p1, %s1199_s26, %s180_s8  }
   0xa   : > { %p1295_p5 = por %p191_p2, %p190_p0  ;;  %p1299_p6 = por %p197_p4, %p196_p3 }
   0xb   : > { %p1012_p7 = scmp.ge.s32.totalorder %s1203_s27, 1  ;;  %p204_p8 = scmp.lt.s32.totalorder %s1203_s27, 5 }
   0xc   : > { %p1056_p9 = scmp.eq.s32.totalorder %s1278_s28, 0  ;;  %s221_s15 = sshll.u32 %s1730_s3, 4  ;;  %s222_s15 = int_to_ptr.hbm [resolvable:$true] %s221_s15 }
   0xd   : > { %p205_p10 = pnand %p1012_p7, %p204_p8  ;;  %s1205_s16 = smov [#allocation2]  }
   0xe   : > { %s223_s17 = sshll.u32 %s1205_s16, 4  ;;  %s1206_s18 = smov 256   ;;  %s224_s17 = int_to_ptr.vmem [resolvable:$true] %s223_s17 }
   0xf   : > { %p1048_p11 = pneg %p205_p10  ;;  %s1207_s19 = smov 16  }
  0x10   : > { %257 = sbr.rel (%p205_p10) target bundleno = 607 (0x25f), region = 48 }
  0x11   : > { %p1049_p12 = pnand %p1056_p9, %p1048_p11 }
  0x13   : > { %1051 = dma.hbm_to_vmem [thread:$0]  (!%p1049_p12), %s222_s15, 9216, %s224_s17, [#allocation3], %s1206_s18, %s1206_s18, %s1207_s19  }
  0x15   : > { %1182 = dma.done.wait (%p1056_p9), [#allocation3], 9216  }
  0x16   : > { %1184 = vsyncadd (%p1056_p9), [#allocation3], 4294958080  ;;  %s1018_s20 = sshll.u32 %s1278_s28, 1  ;;  %v1208_v0 = vmov 0   ;;  %v303_v2 = vld [vmem:[%s1729_s2] sm:$0xff]  ;;  %v305_v5 = vld [vmem:[%s1729_s2 + $0x10] sm:$0xff]  ;;  %v443_v41 = vlaneseq }
  0x17   : > { %p291_p13 = scmp.lt.s32.totalorder %s1018_s20, 7  ;;  %1104 = vset.pattern.permute.xlu1 %v1208_v0  ;;  %1103 = vset.pattern.permute.xlu0 %v1208_v0  ;;  %vm349_vm0 = vcmask 1043456   ;;  %v1039_v10 = vld [vmem:[%s1728_s1] sm:$0xff]  ;;  %vm342_vm1 = vcmask 64512   ;;  %v304_v11 = vld [vmem:[%s1729_s2 + $0x8] sm:$0xff]  ;;  %v306_v12 = vld [vmem:[%s1729_s2 + $0x18] sm:$0xff] }
  0x18   : > { %1105 = vset.pattern.permute.xlu2 %v1208_v0  ;;  %309 = vperm.xlu1 %1104, %v303_v2   ;;  %v1040_v13 = vld [vmem:[%s1728_s1 + $0x8] sm:$0xff]  ;;  %s1209_s23 = smov 15   ;;  %s1210_s8 = smov 16   ;;  %v1424_v43 = vand.u32 127, %v443_v41  ;;  %v411_v45 = vld [vmem:[#allocation2 + $0x100] sm:$0xff]  ;;  %vm887_vm10 = vcmask 261120  }
  0x19   : > { %s1742_s20 = smov (!%p291_p13, %s1018_s20), 7  ;;  %319 = vperm.xlu0 %1103, %v305_v5   ;;  %s1211_s9 = smov 17   ;;  %v454_v46 = vld [vmem:[#allocation2] sm:$0xff]  ;;  %v455_v58 = vld [vmem:[#allocation2 + $0x8] sm:$0xff] }
  0x1a   : > { %s1019_s21 = sshll.u32 %s1742_s20, 2  ;;  %s1212_s13 = smov 1   ;;  %vm445_vm2 = vcmp.lt.s32.totalorder %v1424_v43, 17  ;;  %v412_v61 = vld [vmem:[#allocation2 + $0x108] sm:$0xff]  ;;  %vm494_vm3 = vcmp.lt.s32.totalorder %v1424_v43, 16  ;;  %v504_v63 = vld [vmem:[#allocation2 + $0x40] sm:$0xff] }
  0x1b   : > { %s1319_s29 = scalar_lea.vmem %s1727_s0, %s1019_s21  ;;  %s1213_s14 = smov 113   ;;  %v505_v0 = vld [vmem:[#allocation2 + $0x48] sm:$0xff]  ;;  %vm594_vm4 = vcmp.lt.s32.totalorder %v1424_v43, 1  ;;  %vm544_vm5 = vcmp.lt.s32.totalorder %v1424_v43, 15  ;;  %vm644_vm6 = vcmp.lt.s32.totalorder %v1424_v43, 127  ;;  %vm744_vm7 = vcmp.lt.s32.totalorder %v1424_v43, 112 }
  0x1c   : > { %v298_v1 = vld [vmem:[%s1319_s29] sm:$0xff]  ;;  %s1214_s15 = smov 127   ;;  %s1215_s16 = smov 112   ;;  %vm694_vm8 = vcmp.lt.s32.totalorder %v1424_v43, 113  ;;  %vm794_vm9 = vcmp.lt.s32.totalorder %v1424_v43, 111 }
  0x1d   : > { %v338_v3 = vunpack.c.l.b16 %v298_v1  ;;  %v339_v4 = vunpack.c.h.b16 %v298_v1  ;;  %s1216_s17 = smov 111   ;;  %s1041_s19 = sshll.u32 %s1278_s28, 4 }
  0x1e   : > { %s935_s22 = scalar_lea.hbm %s1734_s7, %s1041_s19 }
  0x1f   : > { %v340_v6 = vpack.c.b16 %v338_v3, %v338_v3  ;;  %v341_v7 = vpack.c.b16 %v339_v4, %v339_v4 }
  0x20   : > { %314 = vperm.xlu1 %1104, %v304_v11  }
  0x21   : > { %v351_v8 = vsel %vm349_vm0, %v340_v6, 0  ;;  %v354_v9 = vsel %vm349_vm0, %v341_v7, 0  ;;  %324 = vperm.xlu0 %1103, %v306_v12  }
  0x22   : > { %363 = vmatpush.bf16.msra.mxu0 %v351_v8  ;;  %382 = vmatpush.bf16.msra.mxu1 %v354_v9 }
  0x25   : > { %1028 = vmatmul.msk.bf16.vlgmr.msra.gmra.mxu0 %vm342_vm1, %v1039_v10  ;;  %1030 = vmatmul.msk.bf16.vlgmr.msra.gmra.mxu1 %vm342_vm1, %v1039_v10 }
  0x35   : > { %1029 = vmatmul.msk.bf16.gmra.mxu0 %vm342_vm1, %v1040_v13  ;;  %1031 = vmatmul.msk.bf16.gmra.mxu1 %vm342_vm1, %v1040_v13 }
  0x8a   : > { %v310_v14 = vpop.permute.xlu1 %309 }
  0x8b   : > { %v320_v32 = vpop.permute.xlu0 %319 }
  0x92   : > { %v315_v24 = vpop.permute.xlu1 %314 }
  0x93   : > { %v325_v44 = vpop.permute.xlu0 %324 }
  0xa2   : > { %v365_v15 = vpop.f32.mrf.mxu0  ;;  %v384_v16 = vpop.f32.mrf.mxu1 }
  0xa3   : > { %v366_v17 = vadd.f32 %v365_v15, %v310_v14  ;;  %v385_v18 = vadd.f32 %v384_v16, %v310_v14  ;;  %v554_v14 = vld [vmem:[#allocation2 + $0x80] sm:$0xff]  ;;  %v555_v15 = vld [vmem:[#allocation2 + $0x88] sm:$0xff] }
  0xa5   : > { %v394_v19 = vmax.f32 %v366_v17, 0.0  ;;  %v395_v20 = vmax.f32 %v385_v18, 0.0  ;;  %v604_v18 = vld [vmem:[#allocation2 + $0xc0] sm:$0xff] }
  0xa7   : > { %v1340_v21 = vmin.f32 %v394_v19, 6.0  ;;  %v1342_v22 = vmin.f32 %v395_v20, 6.0  ;;  %v605_v19 = vld [vmem:[#allocation2 + $0xc8] sm:$0xff] }
  0xa9   : > { %536 = vrot.lane.b32.xlu0 %v1342_v22, %s1209_s23  ;;  %486 = vrot.lane.b32.xlu1 %v1342_v22, %s1210_s8  ;;  %v419_v51 = vmul.f32 %v411_v45, %v1340_v21  ;;  %v420_v2 = vmul.f32 %v412_v61, %v1342_v22 }
  0xaa   : > { %427 = vrot.lane.b32.xlu2 %v1340_v21, %s1211_s9  ;;  %v386_v23 = vpop.f32.mrf.mxu1  ;;  %v367_v27 = vpop.f32.mrf.mxu0 }
  0xab   : > { %v387_v25 = vadd.f32 %v386_v23, %v315_v24  ;;  %v368_v28 = vadd.f32 %v367_v27, %v315_v24 }
  0xad   : > { %v397_v26 = vmax.f32 %v387_v25, 0.0  ;;  %v396_v30 = vmax.f32 %v368_v28, 0.0 }
  0xaf   : > { %v1368_v29 = vmin.f32 %v397_v26, 6.0  ;;  %v1376_v31 = vmin.f32 %v396_v30, 6.0 }
  0xb1   : > { %578 = vrot.lane.b32.xlu0 %v1340_v21, %s1212_s13  ;;  %528 = vrot.lane.b32.xlu1 %v1340_v21, %s1209_s23 }
  0xb2   : > { %435 = vrot.lane.b32.xlu2 %v1342_v22, %s1211_s9  ;;  %v370_v33 = vpop.f32.mrf.mxu0  ;;  %v389_v37 = vpop.f32.mrf.mxu1 }
  0xb3   : > { %v371_v34 = vadd.f32 %v370_v33, %v320_v32  ;;  %v390_v38 = vadd.f32 %v389_v37, %v320_v32  ;;  %v654_v37 = vld [vmem:[#allocation2 + $0x140] sm:$0xff] }
  0xb5   : > { %v398_v35 = vmax.f32 %v371_v34, 0.0  ;;  %v399_v39 = vmax.f32 %v390_v38, 0.0  ;;  %v655_v38 = vld [vmem:[#allocation2 + $0x148] sm:$0xff] }
  0xb7   : > { %v1402_v36 = vmin.f32 %v398_v35, 6.0  ;;  %v1410_v40 = vmin.f32 %v399_v39, 6.0 }
  0xb9   : > { %686 = vrot.lane.b32.xlu0 %v1342_v22, %s1213_s14  ;;  %636 = vrot.lane.b32.xlu1 %v1342_v22, %s1214_s15 }
  0xba   : > { %478 = vrot.lane.b32.xlu2 %v1340_v21, %s1210_s8  ;;  %v372_v47 = vpop.f32.mrf.mxu0  ;;  %v391_v56 = vpop.f32.mrf.mxu1 }
  0xbb   : > { %v373_v53 = vadd.f32 %v372_v47, %v325_v44  ;;  %v392_v60 = vadd.f32 %v391_v56, %v325_v44 }
  0xbd   : > { %v400_v55 = vmax.f32 %v373_v53, 0.0  ;;  %v401_v1 = vmax.f32 %v392_v60, 0.0 }
  0xbf   : > { %v1444_v59 = vmin.f32 %v400_v55, 6.0  ;;  %v1458_v11 = vmin.f32 %v401_v1, 6.0  ;;  %v755_v55 = vld [vmem:[#allocation2 + $0x1c8] sm:$0xff] }
  0xc1   : > { %728 = vrot.lane.b32.xlu0 %v1340_v21, %s1215_s16  ;;  %678 = vrot.lane.b32.xlu1 %v1340_v21, %s1213_s14 }
  0xc2   : > { %586 = vrot.lane.b32.xlu2 %v1342_v22, %s1212_s13 }
  0xc9   : > { %437 = vrot.lane.b32.xlu0 %v1368_v29, %s1211_s9  ;;  %778 = vrot.lane.b32.xlu1 %v1340_v21, %s1216_s17 }
  0xca   : > { %628 = vrot.lane.b32.xlu2 %v1340_v21, %s1214_s15 }
  0xd1   : > { %480 = vrot.lane.b32.xlu0 %v1376_v31, %s1210_s8  ;;  %538 = vrot.lane.b32.xlu1 %v1368_v29, %s1209_s23 }
  0xd2   : > { %736 = vrot.lane.b32.xlu2 %v1342_v22, %s1215_s16 }
  0xd9   : > { %588 = vrot.lane.b32.xlu0 %v1368_v29, %s1212_s13  ;;  %580 = vrot.lane.b32.xlu1 %v1376_v31, %s1212_s13 }
  0xda   : > { %429 = vrot.lane.b32.xlu2 %v1376_v31, %s1211_s9 }
  0xe1   : > { %630 = vrot.lane.b32.xlu0 %v1376_v31, %s1214_s15  ;;  %688 = vrot.lane.b32.xlu1 %v1368_v29, %s1213_s14 }
  0xe2   : > { %488 = vrot.lane.b32.xlu2 %v1368_v29, %s1210_s8 }
  0xe9   : > { %738 = vrot.lane.b32.xlu0 %v1368_v29, %s1215_s16  ;;  %730 = vrot.lane.b32.xlu1 %v1376_v31, %s1215_s16 }
  0xea   : > { %530 = vrot.lane.b32.xlu2 %v1376_v31, %s1209_s23 }
  0xf1   : > { %431 = vrot.lane.b32.xlu0 %v1402_v36, %s1211_s9  ;;  %482 = vrot.lane.b32.xlu1 %v1402_v36, %s1210_s8 }
  0xf2   : > { %638 = vrot.lane.b32.xlu2 %v1368_v29, %s1214_s15 }
  0xf9   : > { %490 = vrot.lane.b32.xlu0 %v1410_v40, %s1210_s8  ;;  %532 = vrot.lane.b32.xlu1 %v1402_v36, %s1209_s23 }
  0xfa   : > { %680 = vrot.lane.b32.xlu2 %v1376_v31, %s1213_s14 }
 0x101   : > { %540 = vrot.lane.b32.xlu0 %v1410_v40, %s1209_s23  ;;  %640 = vrot.lane.b32.xlu1 %v1410_v40, %s1214_s15 }
 0x102   : > { %780 = vrot.lane.b32.xlu2 %v1376_v31, %s1216_s17 }
 0x104   : > { %v428_v42 = vpop.permute.xlu2 %427 }
 0x109   : > { %582 = vrot.lane.b32.xlu0 %v1402_v36, %s1212_s13  ;;  %682 = vrot.lane.b32.xlu1 %v1402_v36, %s1213_s14 }
 0x10a   : > { %439 = vrot.lane.b32.xlu2 %v1410_v40, %s1211_s9 }
 0x10c   : > { %v436_v48 = vpop.permute.xlu2 %435 }
 0x10d   : > { %v446_v49 = vsel %vm445_vm2, %v428_v42, %v436_v48  ;;  %v450_v50 = vsel %vm445_vm2, %v436_v48, %v428_v42 }
 0x10e   : > { %v462_v52 = vmul.f32 %v454_v46, %v450_v50  ;;  %v463_v62 = vmul.f32 %v455_v58, %v446_v49  ;;  %v704_v50 = vld [vmem:[#allocation2 + $0x180] sm:$0xff] }
 0x110   : > { %v470_v54 = vadd.f32 %v462_v52, %v419_v51  ;;  %v471_v8 = vadd.f32 %v463_v62, %v420_v2  ;;  %v705_v51 = vld [vmem:[#allocation2 + $0x188] sm:$0xff] }
 0x111   : > { %690 = vrot.lane.b32.xlu0 %v1410_v40, %s1213_s14  ;;  %790 = vrot.lane.b32.xlu1 %v1410_v40, %s1216_s17 }
 0x112   : > { %590 = vrot.lane.b32.xlu2 %v1410_v40, %s1212_s13 }
 0x114   : > { %v479_v57 = vpop.permute.xlu2 %478 }
 0x119   : > { %732 = vrot.lane.b32.xlu0 %v1402_v36, %s1215_s16  ;;  %433 = vrot.lane.b32.xlu1 %v1444_v59, %s1211_s9 }
 0x11a   : > { %632 = vrot.lane.b32.xlu2 %v1402_v36, %s1214_s15 }
 0x11b   : > { %v537_v3 = vpop.permute.xlu0 %536  ;;  %v487_v4 = vpop.permute.xlu1 %486 }
 0x11c   : > { %v495_v5 = vsel %vm494_vm3, %v479_v57, %v487_v4  ;;  %v499_v6 = vsel %vm494_vm3, %v487_v4, %v479_v57  ;;  %v587_v7 = vpop.permute.xlu2 %586 }
 0x11d   : > { %v512_v9 = vmul.f32 %v504_v63, %v499_v6  ;;  %v513_v10 = vmul.f32 %v505_v0, %v495_v5 }
 0x11f   : > { %v520_v12 = vadd.f32 %v512_v9, %v470_v54  ;;  %v521_v13 = vadd.f32 %v513_v10, %v471_v8  ;;  %v754_v54 = vld [vmem:[#allocation2 + $0x1c0] sm:$0xff] }
 0x121   : > { %441 = vrot.lane.b32.xlu0 %v1458_v11, %s1211_s9  ;;  %492 = vrot.lane.b32.xlu1 %v1458_v11, %s1210_s8  ;;  %s939_s9 = sshll.u32 %s935_s22, 4  ;;  %s940_s9 = int_to_ptr.hbm [resolvable:$true] %s939_s9 }
 0x122   : > { %740 = vrot.lane.b32.xlu2 %v1410_v40, %s1215_s16 }
 0x123   : > { %v579_v16 = vpop.permute.xlu0 %578  ;;  %v529_v17 = vpop.permute.xlu1 %528 }
 0x124   : > { %v595_v20 = vsel %vm594_vm4, %v579_v16, %v587_v7  ;;  %v599_v21 = vsel %vm594_vm4, %v587_v7, %v579_v16  ;;  %v545_v23 = vsel %vm544_vm5, %v529_v17, %v537_v3  ;;  %v549_v24 = vsel %vm544_vm5, %v537_v3, %v529_v17  ;;  %v629_v25 = vpop.permute.xlu2 %628 }
 0x125   : > { %v562_v26 = vmul.f32 %v554_v14, %v549_v24  ;;  %v563_v27 = vmul.f32 %v555_v15, %v545_v23  ;;  %v612_v28 = vmul.f32 %v604_v18, %v599_v21  ;;  %v613_v30 = vmul.f32 %v605_v19, %v595_v20  ;;  %v413_v14 = vld [vmem:[#allocation2 + $0x110] sm:$0xff]  ;;  %v414_v15 = vld [vmem:[#allocation2 + $0x118] sm:$0xff] }
 0x126   : > { %v421_v18 = vmul.f32 %v413_v14, %v1376_v31  ;;  %v422_v19 = vmul.f32 %v414_v15, %v1368_v29  ;;  %v506_v20 = vld [vmem:[#allocation2 + $0x50] sm:$0xff]  ;;  %v507_v21 = vld [vmem:[#allocation2 + $0x58] sm:$0xff] }
 0x127   : > { %v570_v32 = vadd.f32 %v562_v26, %v520_v12  ;;  %v571_v33 = vadd.f32 %v563_v27, %v521_v13  ;;  %v456_v12 = vld [vmem:[#allocation2 + $0x10] sm:$0xff]  ;;  %v457_v13 = vld [vmem:[#allocation2 + $0x18] sm:$0xff] }
 0x129   : > { %592 = vrot.lane.b32.xlu0 %v1458_v11, %s1212_s13  ;;  %542 = vrot.lane.b32.xlu1 %v1458_v11, %s1209_s23  ;;  %v620_v34 = vadd.f32 %v612_v28, %v570_v32  ;;  %v621_v35 = vadd.f32 %v613_v30, %v571_v33  ;;  %v556_v30 = vld [vmem:[#allocation2 + $0x90] sm:$0xff]  ;;  %v557_v32 = vld [vmem:[#allocation2 + $0x98] sm:$0xff] }
 0x12a   : > { %782 = vrot.lane.b32.xlu2 %v1402_v36, %s1216_s17 }
 0x12b   : > { %v687_v39 = vpop.permute.xlu0 %686  ;;  %v637_v41 = vpop.permute.xlu1 %636 }
 0x12c   : > { %v645_v42 = vsel %vm644_vm6, %v629_v25, %v637_v41  ;;  %v649_v44 = vsel %vm644_vm6, %v637_v41, %v629_v25  ;;  %v737_v45 = vpop.permute.xlu2 %736 }
 0x12d   : > { %v662_v46 = vmul.f32 %v654_v37, %v645_v42  ;;  %v663_v47 = vmul.f32 %v655_v38, %v649_v44 }
 0x12f   : > { %v670_v48 = vadd.f32 %v662_v46, %v620_v34  ;;  %v671_v49 = vadd.f32 %v663_v47, %v621_v35  ;;  %v606_v46 = vld [vmem:[#allocation2 + $0xd0] sm:$0xff]  ;;  %v607_v47 = vld [vmem:[#allocation2 + $0xd8] sm:$0xff] }
 0x131   : > { %634 = vrot.lane.b32.xlu0 %v1444_v59, %s1214_s15  ;;  %584 = vrot.lane.b32.xlu1 %v1444_v59, %s1212_s13  ;;  %s1151_s13 = sshra.s32 %s940_s9, 4  ;;  %s1152_s13 = int_to_ptr.hbm [resolvable:$true] %s1151_s13 }
 0x132   : > { %484 = vrot.lane.b32.xlu2 %v1444_v59, %s1210_s8  ;;  %p1158_p3 = scmp.lt.s32.totalorder %s1152_s13, %s1734_s7 }
 0x133   : > { %v729_v52 = vpop.permute.xlu0 %728  ;;  %v679_v53 = vpop.permute.xlu1 %678 }
 0x134   : > { %v745_v56 = vsel %vm744_vm7, %v729_v52, %v737_v45  ;;  %v749_v57 = vsel %vm744_vm7, %v737_v45, %v729_v52  ;;  %v695_v58 = vsel %vm694_vm8, %v679_v53, %v687_v39  ;;  %v699_v60 = vsel %vm694_vm8, %v687_v39, %v679_v53  ;;  %v430_v61 = vpop.permute.xlu2 %429 }
 0x135   : > { %v712_v62 = vmul.f32 %v704_v50, %v695_v58  ;;  %v713_v63 = vmul.f32 %v705_v51, %v699_v60  ;;  %v762_v0 = vmul.f32 %v754_v54, %v745_v56  ;;  %v763_v1 = vmul.f32 %v755_v55, %v749_v57  ;;  %v656_v57 = vld [vmem:[#allocation2 + $0x150] sm:$0xff]  ;;  %v657_v58 = vld [vmem:[#allocation2 + $0x158] sm:$0xff] }
 0x137   : > { %v720_v2 = vadd.f32 %v712_v62, %v670_v48  ;;  %v721_v3 = vadd.f32 %v713_v63, %v671_v49 }
 0x139   : > { %742 = vrot.lane.b32.xlu0 %v1458_v11, %s1215_s16  ;;  %692 = vrot.lane.b32.xlu1 %v1458_v11, %s1213_s14  ;;  %v1507_v4 = vadd.f32 %v762_v0, %v720_v2  ;;  %v1509_v5 = vadd.f32 %v763_v1, %v721_v3  ;;  %v706_v0 = vld [vmem:[#allocation2 + $0x190] sm:$0xff]  ;;  %v707_v1 = vld [vmem:[#allocation2 + $0x198] sm:$0xff] }
 0x13a   : > { %534 = vrot.lane.b32.xlu2 %v1444_v59, %s1209_s23 }
 0x13b   : > { %v438_v6 = vpop.permute.xlu0 %437  ;;  %v1513_v7 = vpop.permute.xlu1 %778 }
 0x13c   : > { %v447_v8 = vsel %vm445_vm2, %v430_v61, %v438_v6  ;;  %v451_v9 = vsel %vm445_vm2, %v438_v6, %v430_v61  ;;  %v489_v10 = vpop.permute.xlu2 %488 }
 0x13d   : > { %v464_v16 = vmul.f32 %v456_v12, %v451_v9  ;;  %v465_v17 = vmul.f32 %v457_v13, %v447_v8 }
 0x13f   : > { %v472_v25 = vadd.f32 %v464_v16, %v421_v18  ;;  %v473_v26 = vadd.f32 %v465_v17, %v422_v19  ;;  %v830_v16 = vld [vmem:[%s1731_s4 + $0x10] sm:$0xff] }
 0x140   : > { %v756_v19 = vld [vmem:[#allocation2 + $0x1d0] sm:$0xff] }
 0x141   : > { %784 = vrot.lane.b32.xlu0 %v1444_v59, %s1216_s17  ;;  %734 = vrot.lane.b32.xlu1 %v1444_v59, %s1215_s16  ;;  %s1157_s16 = scalar_lea.hbm %s1734_s7, 64 }
 0x142   : > { %642 = vrot.lane.b32.xlu2 %v1458_v11, %s1214_s15 }
 0x143   : > { %v481_v23 = vpop.permute.xlu0 %480  ;;  %v539_v24 = vpop.permute.xlu1 %538 }
 0x144   : > { %v496_v27 = vsel %vm494_vm3, %v481_v23, %v489_v10  ;;  %v500_v28 = vsel %vm494_vm3, %v489_v10, %v481_v23  ;;  %v531_v31 = vpop.permute.xlu2 %530  ;;  %v881_v10 = vld [vmem:[%s1733_s6] sm:$0xff] }
 0x145   : > { %v514_v33 = vmul.f32 %v506_v20, %v500_v28  ;;  %v515_v34 = vmul.f32 %v507_v21, %v496_v27  ;;  %v546_v35 = vsel %vm544_vm5, %v531_v31, %v539_v24  ;;  %v550_v37 = vsel %vm544_vm5, %v539_v24, %v531_v31  ;;  %v757_v20 = vld [vmem:[#allocation2 + $0x1d8] sm:$0xff] }
 0x146   : > { %v564_v41 = vmul.f32 %v556_v30, %v550_v37  ;;  %v565_v42 = vmul.f32 %v557_v32, %v546_v35  ;;  %v829_v30 = vld [vmem:[%s1731_s4 + $0x8] sm:$0xff] }
 0x147   : > { %v522_v38 = vadd.f32 %v514_v33, %v472_v25  ;;  %v523_v39 = vadd.f32 %v515_v34, %v473_v26 }
 0x149   : > { %v572_v44 = vadd.f32 %v564_v41, %v522_v38  ;;  %v573_v45 = vadd.f32 %v565_v42, %v523_v39  ;;  %786 = vrot.lane.b32.xlu0 %v1342_v22, %s1216_s17  ;;  %788 = vrot.lane.b32.xlu1 %v1368_v29, %s1216_s17  ;;  %v831_v22 = vld [vmem:[%s1731_s4 + $0x18] sm:$0xff]  ;;  %v828_v29 = vld [vmem:[%s1731_s4] sm:$0xff]  ;;  %v459_v41 = vld [vmem:[#allocation2 + $0x28] sm:$0xff] }
 0x14a   : > { %684 = vrot.lane.b32.xlu2 %v1444_v59, %s1213_s14  ;;  %v458_v39 = vld [vmem:[#allocation2 + $0x20] sm:$0xff] }
 0x14b   : > { %v589_v48 = vpop.permute.xlu0 %588  ;;  %v581_v49 = vpop.permute.xlu1 %580  ;;  %v415_v42 = vld [vmem:[#allocation2 + $0x120] sm:$0xff] }
 0x14c   : > { %v596_v50 = vsel %vm594_vm4, %v581_v49, %v589_v48  ;;  %v600_v51 = vsel %vm594_vm4, %v589_v48, %v581_v49  ;;  %v639_v52 = vpop.permute.xlu2 %638  ;;  %v509_v48 = vld [vmem:[#allocation2 + $0x68] sm:$0xff]  ;;  %v423_v49 = vmul.f32 %v415_v42, %v1402_v36 }
 0x14d   : > { %v614_v53 = vmul.f32 %v606_v46, %v600_v51  ;;  %v615_v54 = vmul.f32 %v607_v47, %v596_v50  ;;  %v508_v47 = vld [vmem:[#allocation2 + $0x60] sm:$0xff] }
 0x14f   : > { %v622_v55 = vadd.f32 %v614_v53, %v572_v44  ;;  %v623_v56 = vadd.f32 %v615_v54, %v573_v45  ;;  %v416_v44 = vld [vmem:[#allocation2 + $0x128] sm:$0xff] }
 0x150   : > { %v424_v50 = vmul.f32 %v416_v44, %v1410_v40 }
 0x151   : > { %849 = vperm.xlu0 %1103, %v831_v22   ;;  %834 = vperm.xlu1 %1104, %v828_v29  }
 0x152   : > { %792 = vrot.lane.b32.xlu2 %v1458_v11, %s1216_s17  ;;  %s287_s17 = sand.u32 1, %s1195_s25  }
 0x153   : > { %v631_v60 = vpop.permute.xlu0 %630  ;;  %v689_v61 = vpop.permute.xlu1 %688  ;;  %s1017_s18 = sshll.u32 %s287_s17, 4  ;;  %s924_s28 = scalar_lea.sflag [#allocation4], %s287_s17 }
 0x154   : > { %v646_v62 = vsel %vm644_vm6, %v631_v60, %v639_v52  ;;  %v650_v63 = vsel %vm644_vm6, %v639_v52, %v631_v60  ;;  %v681_v2 = vpop.permute.xlu2 %680  ;;  %s289_s23 = scalar_lea.vmem [#allocation5], %s1017_s18 }
 0x155   : > { %v664_v3 = vmul.f32 %v656_v57, %v646_v62  ;;  %v665_v6 = vmul.f32 %v657_v58, %v650_v63  ;;  %v696_v8 = vsel %vm694_vm8, %v681_v2, %v689_v61  ;;  %v700_v9 = vsel %vm694_vm8, %v689_v61, %v681_v2  ;;  %v558_v61 = vld [vmem:[#allocation2 + $0xa0] sm:$0xff]  ;;  %v559_v62 = vld [vmem:[#allocation2 + $0xa8] sm:$0xff]  ;;  %s937_s8 = sshll.u32 %s289_s23, 4  ;;  %s938_s8 = int_to_ptr.vmem [resolvable:$true] %s937_s8 }
 0x156   : > { %v714_v14 = vmul.f32 %v706_v0, %v696_v8  ;;  %v715_v15 = vmul.f32 %v707_v1, %v700_v9  ;;  %v608_v9 = vld [vmem:[#allocation2 + $0xe0] sm:$0xff] }
 0x157   : > { %v672_v12 = vadd.f32 %v664_v3, %v622_v55  ;;  %v673_v13 = vadd.f32 %v665_v6, %v623_v56 }
 0x159   : > { %v722_v17 = vadd.f32 %v714_v14, %v672_v12  ;;  %v723_v18 = vadd.f32 %v715_v15, %v673_v13  ;;  %884 = vperm.xlu0 %1103, %v881_v10   ;;  %v609_v10 = vld [vmem:[#allocation2 + $0xe8] sm:$0xff]  ;;  %v658_v14 = vld [vmem:[#allocation2 + $0x160] sm:$0xff] }
 0x15a   : > { %844 = vperm.xlu2 %1105, %v830_v16   ;;  %v659_v15 = vld [vmem:[#allocation2 + $0x168] sm:$0xff] }
 0x15b   : > { %v739_v21 = vpop.permute.xlu0 %738  ;;  %v731_v23 = vpop.permute.xlu1 %730 }
 0x15c   : > { %v746_v24 = vsel %vm744_vm7, %v731_v23, %v739_v21  ;;  %v750_v25 = vsel %vm744_vm7, %v739_v21, %v731_v23  ;;  %v1571_v26 = vpop.permute.xlu2 %780 }
 0x15d   : > { %v764_v27 = vmul.f32 %v756_v19, %v746_v24  ;;  %v765_v28 = vmul.f32 %v757_v20, %v750_v25 }
 0x15f   : > { %v1576_v32 = vadd.f32 %v764_v27, %v722_v17  ;;  %v1578_v31 = vadd.f32 %v765_v28, %v723_v18 }
 0x162   : > { %839 = vperm.xlu2 %1105, %v829_v30  }
 0x163   : > { %v432_v33 = vpop.permute.xlu0 %431  ;;  %v483_v34 = vpop.permute.xlu1 %482 }
 0x164   : > { %v440_v35 = vpop.permute.xlu2 %439 }
 0x165   : > { %v448_v37 = vsel %vm445_vm2, %v432_v33, %v440_v35  ;;  %v452_v38 = vsel %vm445_vm2, %v440_v35, %v432_v33 }
 0x166   : > { %v466_v45 = vmul.f32 %v458_v39, %v452_v38  ;;  %v467_v46 = vmul.f32 %v459_v41, %v448_v37 }
 0x168   : > { %v474_v29 = vadd.f32 %v466_v45, %v423_v49  ;;  %v475_v55 = vadd.f32 %v467_v46, %v424_v50 }
 0x16b   : > { %v491_v51 = vpop.permute.xlu0 %490  ;;  %v533_v52 = vpop.permute.xlu1 %532 }
 0x16c   : > { %v497_v53 = vsel %vm494_vm3, %v483_v34, %v491_v51  ;;  %v501_v54 = vsel %vm494_vm3, %v491_v51, %v483_v34  ;;  %v591_v22 = vpop.permute.xlu2 %590 }
 0x16d   : > { %v516_v56 = vmul.f32 %v508_v47, %v501_v54  ;;  %v517_v57 = vmul.f32 %v509_v48, %v497_v53  ;;  %v461_v53 = vld [vmem:[#allocation2 + $0x38] sm:$0xff] }
 0x16f   : > { %v524_v58 = vadd.f32 %v516_v56, %v474_v29  ;;  %v525_v60 = vadd.f32 %v517_v57, %v475_v55  ;;  %v417_v29 = vld [vmem:[#allocation2 + $0x130] sm:$0xff]  ;;  %v418_v55 = vld [vmem:[#allocation2 + $0x138] sm:$0xff] }
 0x173   : > { %v541_v36 = vpop.permute.xlu0 %540  ;;  %v641_v63 = vpop.permute.xlu1 %640 }
 0x174   : > { %v547_v40 = vsel %vm544_vm5, %v533_v52, %v541_v36  ;;  %v551_v0 = vsel %vm544_vm5, %v541_v36, %v533_v52  ;;  %v633_v1 = vpop.permute.xlu2 %632  ;;  %v460_v52 = vld [vmem:[#allocation2 + $0x30] sm:$0xff] }
 0x175   : > { %v566_v2 = vmul.f32 %v558_v61, %v551_v0  ;;  %v567_v3 = vmul.f32 %v559_v62, %v547_v40  ;;  %v647_v16 = vsel %vm644_vm6, %v633_v1, %v641_v63  ;;  %v651_v17 = vsel %vm644_vm6, %v641_v63, %v633_v1  ;;  %v510_v61 = vld [vmem:[#allocation2 + $0x70] sm:$0xff]  ;;  %v511_v63 = vld [vmem:[#allocation2 + $0x78] sm:$0xff] }
 0x176   : > { %v666_v24 = vmul.f32 %v658_v14, %v647_v16  ;;  %v667_v25 = vmul.f32 %v659_v15, %v651_v17  ;;  %v560_v1 = vld [vmem:[#allocation2 + $0xb0] sm:$0xff] }
 0x177   : > { %v574_v6 = vadd.f32 %v566_v2, %v524_v58  ;;  %v575_v8 = vadd.f32 %v567_v3, %v525_v60  ;;  %v425_v58 = vmul.f32 %v417_v29, %v1444_v59  ;;  %v426_v60 = vmul.f32 %v418_v55, %v1458_v11  ;;  %v561_v2 = vld [vmem:[#allocation2 + $0xb8] sm:$0xff]  ;;  %v610_v17 = vld [vmem:[#allocation2 + $0xf0] sm:$0xff] }
 0x17b   : > { %v583_v12 = vpop.permute.xlu0 %582  ;;  %v683_v13 = vpop.permute.xlu1 %682 }
 0x17c   : > { %v597_v18 = vsel %vm594_vm4, %v583_v12, %v591_v22  ;;  %v601_v19 = vsel %vm594_vm4, %v591_v22, %v583_v12  ;;  %v741_v20 = vpop.permute.xlu2 %740 }
 0x17d   : > { %v616_v21 = vmul.f32 %v608_v9, %v601_v19  ;;  %v617_v23 = vmul.f32 %v609_v10, %v597_v18  ;;  %v611_v18 = vld [vmem:[#allocation2 + $0xf8] sm:$0xff] }
 0x17f   : > { %v624_v27 = vadd.f32 %v616_v21, %v574_v6  ;;  %v625_v28 = vadd.f32 %v617_v23, %v575_v8  ;;  %v708_v6 = vld [vmem:[#allocation2 + $0x1a0] sm:$0xff]  ;;  %v709_v8 = vld [vmem:[#allocation2 + $0x1a8] sm:$0xff] }
 0x180   : > { %v758_v23 = vld [vmem:[#allocation2 + $0x1e0] sm:$0xff] }
 0x181   : > { %v1602_v30 = vadd.f32 %v666_v24, %v624_v27  ;;  %v1604_v33 = vadd.f32 %v667_v25, %v625_v28  ;;  %v759_v24 = vld [vmem:[#allocation2 + $0x1e8] sm:$0xff] }
 0x183   : > { %v691_v34 = vpop.permute.xlu0 %690  ;;  %v1606_v35 = vpop.permute.xlu1 %790 }
 0x184   : > { %v1608_v37 = vpop.permute.xlu2 %782  ;;  %v697_v9 = vsel %vm694_vm8, %v683_v13, %v691_v34  ;;  %v701_v10 = vsel %vm694_vm8, %v691_v34, %v683_v13 }
 0x185   : > { %v716_v34 = vmul.f32 %v708_v6, %v697_v9  ;;  %v760_v6 = vld [vmem:[#allocation2 + $0x1f0] sm:$0xff] }
 0x187   : > { %v724_v55 = vadd.f32 %v716_v34, %v1602_v30  ;;  %v801_v30 = vsel %vm794_vm9, %v1606_v35, %v1608_v37 }
 0x18b   : > { %v733_v38 = vpop.permute.xlu0 %732  ;;  %v434_v39 = vpop.permute.xlu1 %433 }
 0x18c   : > { %v485_v41 = vpop.permute.xlu2 %484  ;;  %v747_v15 = vsel %vm744_vm7, %v733_v38, %v741_v20  ;;  %v751_v16 = vsel %vm744_vm7, %v741_v20, %v733_v38 }
 0x18d   : > { %v766_v38 = vmul.f32 %v758_v23, %v747_v15 }
 0x193   : > { %v442_v42 = vpop.permute.xlu0 %441  ;;  %v493_v44 = vpop.permute.xlu1 %492 }
 0x194   : > { %v535_v45 = vpop.permute.xlu2 %534  ;;  %v449_v54 = vsel %vm445_vm2, %v434_v39, %v442_v42  ;;  %v453_v22 = vsel %vm445_vm2, %v442_v42, %v434_v39  ;;  %v498_v40 = vsel %vm494_vm3, %v485_v41, %v493_v44  ;;  %v502_v0 = vsel %vm494_vm3, %v493_v44, %v485_v41 }
 0x195   : > { %v468_v56 = vmul.f32 %v460_v52, %v453_v22  ;;  %v469_v57 = vmul.f32 %v461_v53, %v449_v54  ;;  %v518_v25 = vmul.f32 %v510_v61, %v502_v0  ;;  %v519_v13 = vmul.f32 %v511_v63, %v498_v40  ;;  %v660_v53 = vld [vmem:[#allocation2 + $0x170] sm:$0xff]  ;;  %v808_v63 = vld [vmem:[#allocation2 + $0x220] sm:$0xff]  ;;  %v809_v40 = vld [vmem:[#allocation2 + $0x228] sm:$0xff] }
 0x196   : > { %v717_v39 = vmul.f32 %v709_v8, %v701_v10  ;;  %v774_v0 = vadd.f32 %v766_v38, %v724_v55  ;;  %v761_v8 = vld [vmem:[#allocation2 + $0x1f8] sm:$0xff]  ;;  %v817_v10 = vmul.f32 %v809_v40, %v801_v30 }
 0x197   : > { %v476_v12 = vadd.f32 %v468_v56, %v425_v58  ;;  %v477_v14 = vadd.f32 %v469_v57, %v426_v60  ;;  %v710_v57 = vld [vmem:[#allocation2 + $0x1b0] sm:$0xff]  ;;  %v711_v58 = vld [vmem:[#allocation2 + $0x1b8] sm:$0xff] }
 0x198   : > { %v725_v56 = vadd.f32 %v717_v39, %v1604_v33 }
 0x199   : > { %v526_v41 = vadd.f32 %v518_v25, %v476_v12  ;;  %v527_v42 = vadd.f32 %v519_v13, %v477_v14  ;;  %v804_v25 = vld [vmem:[#allocation2 + $0x200] sm:$0xff]  ;;  %v805_v13 = vld [vmem:[#allocation2 + $0x208] sm:$0xff] }
 0x19b   : > { %v593_v46 = vpop.permute.xlu0 %592  ;;  %v543_v47 = vpop.permute.xlu1 %542 }
 0x19c   : > { %v643_v48 = vpop.permute.xlu2 %642  ;;  %v548_v3 = vsel %vm544_vm5, %v535_v45, %v543_v47  ;;  %v552_v59 = vsel %vm544_vm5, %v543_v47, %v535_v45  ;;  %v767_v45 = vmul.f32 %v759_v24, %v751_v16 }
 0x19d   : > { %v568_v27 = vmul.f32 %v560_v1, %v552_v59  ;;  %v569_v28 = vmul.f32 %v561_v2, %v548_v3 }
 0x19e   : > { %v775_v1 = vadd.f32 %v767_v45, %v725_v56 }
 0x19f   : > { %v576_v47 = vadd.f32 %v568_v27, %v526_v41  ;;  %v577_v52 = vadd.f32 %v569_v28, %v527_v42  ;;  %v810_v42 = vld [vmem:[#allocation2 + $0x230] sm:$0xff] }
 0x1a0   : > { %v825_v24 = vadd.f32 %v817_v10, %v775_v1 }
 0x1a3   : > { %v635_v49 = vpop.permute.xlu0 %634  ;;  %v585_v50 = vpop.permute.xlu1 %584 }
 0x1a4   : > { %v1610_v51 = vpop.permute.xlu2 %684  ;;  %v598_v19 = vsel %vm594_vm4, %v585_v50, %v593_v46  ;;  %v602_v21 = vsel %vm594_vm4, %v593_v46, %v585_v50  ;;  %v661_v46 = vld [vmem:[#allocation2 + $0x178] sm:$0xff]  ;;  %v648_v50 = vsel %vm644_vm6, %v635_v49, %v643_v48  ;;  %v652_v54 = vsel %vm644_vm6, %v643_v48, %v635_v49 }
 0x1a5   : > { %v618_v44 = vmul.f32 %v610_v17, %v602_v21  ;;  %v619_v20 = vmul.f32 %v611_v18, %v598_v19  ;;  %v797_v48 = vsel %vm794_vm9, %v1608_v37, %v1606_v35  ;;  %v668_v2 = vmul.f32 %v660_v53, %v648_v50  ;;  %v806_v17 = vld [vmem:[#allocation2 + $0x210] sm:$0xff]  ;;  %v807_v18 = vld [vmem:[#allocation2 + $0x218] sm:$0xff] }
 0x1a6   : > { %v669_v3 = vmul.f32 %v661_v46, %v652_v54  ;;  %v816_v37 = vmul.f32 %v808_v63, %v797_v48 }
 0x1a7   : > { %v626_v33 = vadd.f32 %v618_v44, %v576_v47  ;;  %v627_v49 = vadd.f32 %v619_v20, %v577_v52  ;;  %v811_v44 = vld [vmem:[#allocation2 + $0x238] sm:$0xff] }
 0x1a8   : > { %v824_v23 = vadd.f32 %v816_v37, %v774_v0 }
 0x1a9   : > { %v676_v12 = vadd.f32 %v668_v2, %v626_v33  ;;  %v677_v14 = vadd.f32 %v669_v3, %v627_v49 }
 0x1ab   : > { %v1618_v62 = vpop.permute.xlu0 %742  ;;  %v693_v36 = vpop.permute.xlu1 %692 }
 0x1ac   : > { %v1628_v11 = vpop.permute.xlu2 %792  ;;  %v698_v60 = vsel %vm694_vm8, %v1610_v51, %v693_v36  ;;  %v702_v61 = vsel %vm694_vm8, %v693_v36, %v1610_v51 }
 0x1ad   : > { %v718_v51 = vmul.f32 %v710_v57, %v698_v60  ;;  %v719_v36 = vmul.f32 %v711_v58, %v702_v61 }
 0x1af   : > { %v726_v19 = vadd.f32 %v718_v51, %v676_v12  ;;  %v727_v21 = vadd.f32 %v719_v36, %v677_v14 }
 0x1b3   : > { %v785_v22 = vpop.permute.xlu0 %784  ;;  %v735_v29 = vpop.permute.xlu1 %734 }
 0x1b4   : > { %v845_v59 = vpop.permute.xlu2 %844  ;;  %v748_v9 = vsel %vm744_vm7, %v735_v29, %v1618_v62  ;;  %v752_v35 = vsel %vm744_vm7, %v1618_v62, %v735_v29  ;;  %v798_v20 = vsel %vm794_vm9, %v785_v22, %v1628_v11  ;;  %v802_v38 = vsel %vm794_vm9, %v1628_v11, %v785_v22 }
 0x1b5   : > { %v768_v15 = vmul.f32 %v760_v6, %v748_v9  ;;  %v769_v16 = vmul.f32 %v761_v8, %v752_v35  ;;  %v856_v54 = vadd.f32 %v845_v59, %v824_v23  ;;  %v857_v29 = vadd.f32 %v845_v59, %v825_v24 }
 0x1b6   : > { %v818_v56 = vmul.f32 %v810_v42, %v798_v20  ;;  %v819_v57 = vmul.f32 %v811_v44, %v802_v38 }
 0x1b7   : > { %v776_v47 = vadd.f32 %v768_v15, %v726_v19  ;;  %v777_v52 = vadd.f32 %v769_v16, %v727_v21  ;;  %v864_v48 = vmax.f32 %v856_v54, 0.0  ;;  %v865_v30 = vmax.f32 %v857_v29, 0.0  ;;  %v876_v16 = vld [vmem:[%s1732_s5] sm:$0xf] }
 0x1b9   : > { %v826_v61 = vadd.f32 %v818_v56, %v776_v47  ;;  %v827_v43 = vadd.f32 %v819_v57, %v777_v52  ;;  %v872_v8 = vmin.f32 %v864_v48, 6.0 }
 0x1bb   : > { %v787_v27 = vpop.permute.xlu0 %786  ;;  %v789_v28 = vpop.permute.xlu1 %788 }
 0x1bc   : > { %v795_v62 = vsel %vm794_vm9, %v1513_v7, %v787_v27  ;;  %v799_v34 = vsel %vm794_vm9, %v787_v27, %v1513_v7  ;;  %v796_v39 = vsel %vm794_vm9, %v1571_v26, %v789_v28  ;;  %v800_v41 = vsel %vm794_vm9, %v789_v28, %v1571_v26  ;;  %v840_v50 = vpop.permute.xlu2 %839 }
 0x1bd   : > { %v814_v45 = vmul.f32 %v806_v17, %v796_v39  ;;  %v815_v7 = vmul.f32 %v807_v18, %v800_v41  ;;  %v812_v53 = vmul.f32 %v804_v25, %v795_v62  ;;  %v813_v46 = vmul.f32 %v805_v13, %v799_v34  ;;  %v1106_v18 = vld [vmem:[%s1319_s29] sm:$0xff]  ;;  %s1153_s29 = scalar_lea.hbm %s1152_s13, 16 }
 0x1be   : > { %v917_v19 = vunpack.c.l.bf16 %v1106_v18  ;;  %v918_v21 = vunpack.c.h.bf16 %v1106_v18  ;;  %p1154_p0 = scmp.ne.s32.totalorder %s1152_s13, %s1153_s29  ;;  %p1159_p4 = scmp.lt.s32.totalorder %s1157_s16, %s1153_s29 }
 0x1bf   : > { %v822_v26 = vadd.f32 %v814_v45, %v1576_v32  ;;  %v823_v55 = vadd.f32 %v815_v7, %v1578_v31  ;;  %v820_v11 = vadd.f32 %v812_v53, %v1507_v4  ;;  %v821_v22 = vadd.f32 %v813_v46, %v1509_v5 }
 0x1c0   : > { %v873_v4 = vmin.f32 %v865_v30, 6.0  ;;  %p1155_p1 = pnand %p1154_p0, %p1295_p5  ;;  %p1160_p7 = por %p1159_p4, %p1158_p3 }
 0x1c1   : > { %v854_v58 = vadd.f32 %v840_v50, %v822_v26  ;;  %v855_v60 = vadd.f32 %v840_v50, %v823_v55 }
 0x1c2   : > { %p1156_p2 = pneg %p1155_p1 }
 0x1c3   : > { %v862_v33 = vmax.f32 %v854_v58, 0.0  ;;  %v863_v49 = vmax.f32 %v855_v60, 0.0  ;;  %v850_v63 = vpop.permute.xlu0 %849  ;;  %v835_v40 = vpop.permute.xlu1 %834 }
 0x1c4   : > { %v858_v0 = vadd.f32 %v850_v63, %v826_v61  ;;  %v859_v32 = vadd.f32 %v850_v63, %v827_v43  ;;  %v852_v1 = vadd.f32 %v835_v40, %v820_v11  ;;  %v853_v31 = vadd.f32 %v835_v40, %v821_v22  ;;  %p1161_p8 = pnand %p1160_p7, %p1156_p2 }
 0x1c5   : > { %v870_v36 = vmin.f32 %v862_v33, 6.0  ;;  %v871_v6 = vmin.f32 %v863_v49, 6.0 }
 0x1c6   : > { %v866_v2 = vmax.f32 %v858_v0, 0.0  ;;  %v867_v3 = vmax.f32 %v859_v32, 0.0  ;;  %v860_v59 = vmax.f32 %v852_v1, 0.0  ;;  %v861_v51 = vmax.f32 %v853_v31, 0.0 }
 0x1c8   : > { %v868_v9 = vmin.f32 %v860_v59, 6.0  ;;  %v869_v5 = vmin.f32 %v861_v51, 6.0  ;;  %v874_v35 = vmin.f32 %v866_v2, 6.0  ;;  %v875_v37 = vmin.f32 %v867_v3, 6.0 }
 0x1ca   : > { %v879_v10 = vpack.c.bf16 %v874_v35, %v872_v8  ;;  %v880_v12 = vpack.c.bf16 %v875_v37, %v873_v4  ;;  %v877_v14 = vpack.c.bf16 %v870_v36, %v868_v9  ;;  %v878_v15 = vpack.c.bf16 %v871_v6, %v869_v5 }
 0x1cb   : > { %v885_v17 = vpop.permute.xlu0 %884 }
 0x1cc   : > { %897 = vmatpush.bf16.msra.mxu2 %v879_v10  ;;  %910 = vmatpush.bf16.msra.mxu3 %v880_v12 }
 0x1d0   : > { %898 = vmatpush.bf16.msra.mxu2 %v877_v14  ;;  %911 = vmatpush.bf16.msra.mxu3 %v878_v15 }
 0x1d3   : > { %1032 = vmatmul.msk.bf16.vlgmr.msra.gmra.mxu2 %vm887_vm10, %v876_v16  ;;  %1033 = vmatmul.msk.bf16.vlgmr.msra.gmra.mxu3 %vm887_vm10, %v876_v16 }
 0x256   : > { %v900_v23 = vpop.f32.mrf.mxu2  ;;  %v913_v24 = vpop.f32.mrf.mxu3 }
 0x257   : > { %v901_v25 = vadd.f32 %v900_v23, %v885_v17  ;;  %v914_v13 = vadd.f32 %v913_v24, %v885_v17 }
 0x259   : > { %v919_v27 = vadd.f32 %v917_v19, %v901_v25  ;;  %v920_v28 = vadd.f32 %v918_v21, %v914_v13 }
 0x25b   : > { %921 = vst [vmem:[%s289_s23] sm:$0xff] %v919_v27 }
 0x25c   : > { %922 = vst [vmem:[%s289_s23 + $0x8] sm:$0xff] %v920_v28 }
 0x25d   : > { %1164 = shalt.err (!%p1161_p8)
}
 0x25e   : > { %1046 = dma.vmem_to_hbm [thread:$0]  (%p1295_p5), %s938_s8, 256, %s940_s9, %s924_s28   ;;  %v902_v62 = vpop.f32.mrf.mxu2  ;;  %v915_v34 = vpop.f32.mrf.mxu3 }
 0x25f PF: > { %p1058_p9 = scmp.ge.s32.totalorder %s1203_s27, 2  ;;  %s951_s17 = sand.u32 1, %s1191_s24  }
 0x260   : > { %s952_s20 = scalar_lea.sflag [#allocation4], %s951_s17 }
 0x261   : > { %p1053_p10 = pnand %p1058_p9, %p1299_p6 }
 0x263   : > { %p1054_p11 = pneg %p1053_p10 }
 0x265   : > { %1186 = dma.done.wait (%p1054_p11), %s952_s20, 256  }
 0x266   : > { %1188 = vsyncadd (%p1054_p11), %s952_s20, 4294967040  ;;  %p18_p5 = scmp.ge.s32.totalorder %s1282_s30, 6   ;;  %s1737_s24 = smov %s1195_s25 }
 0x267   : > { %s1738_s25 = smov %s1199_s26  ;;  %s1739_s26 = smov %s1293_s10 }
 0x268   : > { %s1740_s27 = smov %s1282_s30  ;;  %20 = sbr.rel (!%p18_p5) target bundleno = 4 (0x4), region = 96 }
 0x26d   :  { %958 = vsyncpa [#allocation3], 1 }
 0x26e   :  { %960 = vsyncpa [#allocation3 + $0x1], 1 }
 0x26f   :  { %961 = vsyncpa [#allocation4], 1 }
 0x270   :  { %963 = vsyncpa [#allocation4 + $0x1], 1 }

</bundles_post_ra>
